<compile_context>
chip_gen: v5e
topology: v5e:2x2
jax: 0.10.0
libtpu: 0.0.40
codegen_flags: <defaults>
</compile_context>

<pallas_src>
import jax
import jax.numpy as jnp
from jax import lax
from jax.experimental import pallas as pl
from jax.experimental.pallas import tpu as pltpu

INPUT_SIZE = 35
HIDDEN = 12
OUT_FEATURES = 35
BP = 8  # batch padded to one sublane tile


def rnn_kernel(x_ref, wih_ref, whh_ref, b_ref, wfc_ref, bfc_ref, out_ref):
    """Fused LSTM + relu + fc on padded batch.

    x_ref   : (T*BP, Din)  f32   time-major, batch padded to BP rows/step
    wih_ref : (Din, 4H)    f32   concatenated gate weights (i, f, g, o)
    whh_ref : (H,   4H)    f32
    b_ref   : (1,   4H)    f32   b_ih + b_hh
    wfc_ref : (H, Dout)    f32
    bfc_ref : (1, Dout)    f32
    out_ref : (BP, Dout)   f32   (padded rows are garbage; wrapper slices [:B])
    """
    TB, _ = x_ref.shape
    H = whh_ref.shape[0]
    T = TB // BP

    # Hoisted input projection + bias: one well-shaped matmul for all timesteps,
    # so the serial loop only carries the recurrent h @ Whh dependency.
    xp = jnp.dot(x_ref[...], wih_ref[...],
                 preferred_element_type=jnp.float32) + b_ref[...]      # (T*BP, 4H)

    whh = whh_ref[...]                                                 # (H, 4H), read once
    h = jnp.zeros((BP, H), jnp.float32)
    c = jnp.zeros((BP, H), jnp.float32)

    # Fully unrolled static time loop (T=8, static); slices are 8-row aligned.
    for t in range(T):
        pre = xp[t * BP:(t + 1) * BP, :] + jnp.dot(
            h, whh, preferred_element_type=jnp.float32)                # (BP, 4H)
        # (BP, 4H) = (8, 48) fits in a single vreg: one EUP pass each.
        sig = jax.nn.sigmoid(pre)
        th = jnp.tanh(pre)
        i_g = sig[:, 0 * H:1 * H]
        f_g = sig[:, 1 * H:2 * H]
        g_g = th[:, 2 * H:3 * H]
        o_g = sig[:, 3 * H:4 * H]
        c = f_g * c + i_g * g_g
        h = o_g * jnp.tanh(c)

    # output[:, -1:] -> relu -> fc1
    h_last = jnp.maximum(h, 0.0)
    out_ref[...] = jnp.dot(h_last, wfc_ref[...],
                           preferred_element_type=jnp.float32) + bfc_ref[...]


@jax.jit
def rnn_forward(x_btd, w_ih, w_hh, b_ih, b_hh, w_fc, b_fc):
    """x_btd: (B, T, Din) f32; PyTorch-layout LSTM/Linear params -> (B, 1, Dout)."""
    B, T, Din = x_btd.shape
    H4 = w_ih.shape[0]
    H = H4 // 4
    Dout = w_fc.shape[0]

    # Re-layout once (fused into this single jitted dispatch):
    # PyTorch (4H, Din)/(4H, H) -> (Din, 4H)/(H, 4H), gate order [i,f,g,o].
    wih_cat = jnp.transpose(w_ih).astype(jnp.float32)          # (Din, 4H)
    whh_cat = jnp.transpose(w_hh).astype(jnp.float32)          # (H,   4H)
    b_cat = (b_ih + b_hh).reshape(1, H4).astype(jnp.float32)   # (1,   4H)
    wfc = jnp.transpose(w_fc).astype(jnp.float32)              # (H, Dout)
    bfc = b_fc.reshape(1, Dout).astype(jnp.float32)            # (1, Dout)

    # Time-major, batch padded to BP=8 rows per step -> sublane-aligned slices.
    xf = x_btd.astype(jnp.float32)
    x_pad = jnp.pad(xf, ((0, BP - B), (0, 0), (0, 0)))          # (BP, T, Din)
    x2d = jnp.transpose(x_pad, (1, 0, 2)).reshape(T * BP, Din)  # (T*BP, Din)

    vmem = pl.BlockSpec(memory_space=pltpu.MemorySpace.VMEM)
    out = pl.pallas_call(
        rnn_kernel,
        out_shape=jax.ShapeDtypeStruct((BP, Dout), jnp.float32),
        in_specs=[vmem] * 6,
        out_specs=vmem,
    )(x2d, wih_cat, whh_cat, b_cat, wfc, bfc)
    return out[:B].reshape(B, 1, Dout)


def reference_forward(x_btd, w_ih, w_hh, b_ih, b_hh, w_fc, b_fc):
    """Pure-JAX reference with identical semantics (sanity check)."""
    B, T, Din = x_btd.shape
    H = w_hh.shape[1]
    Wih = w_ih.T
    Whh = w_hh.T
    bb = (b_ih + b_hh)[None, :]
    h = jnp.zeros((B, H), jnp.float32)
    c = jnp.zeros((B, H), jnp.float32)

    def step(carry, xt):
        h, c = carry
        pre = xt @ Wih + h @ Whh + bb
        i = jax.nn.sigmoid(pre[:, 0 * H:1 * H])
        f = jax.nn.sigmoid(pre[:, 1 * H:2 * H])
        g = jnp.tanh(pre[:, 2 * H:3 * H])
        o = jax.nn.sigmoid(pre[:, 3 * H:4 * H])
        c = f * c + i * g
        h = o * jnp.tanh(c)
        return (h, c), None

    (h, c), _ = lax.scan(step, (h, c), jnp.transpose(x_btd, (1, 0, 2)))
    out = jnp.maximum(h, 0.0) @ w_fc.T + b_fc[None, :]
    return out.reshape(B, 1, -1)


if __name__ == "__main__":
    key = jax.random.PRNGKey(0)
    kx, k1, k2, k3, k4, k5, k6 = jax.random.split(key, 7)

    B, T = 2, 8
    H4 = 4 * HIDDEN
    # PyTorch-style init: uniform(-1/sqrt(H), 1/sqrt(H)), PyTorch parameter layouts.
    s = 1.0 / jnp.sqrt(jnp.float32(HIDDEN))
    w_ih = jax.random.uniform(k1, (H4, INPUT_SIZE), jnp.float32, -s, s)   # lstm.weight_ih_l0
    w_hh = jax.random.uniform(k2, (H4, HIDDEN), jnp.float32, -s, s)       # lstm.weight_hh_l0
    b_ih = jax.random.uniform(k3, (H4,), jnp.float32, -s, s)              # lstm.bias_ih_l0
    b_hh = jax.random.uniform(k4, (H4,), jnp.float32, -s, s)              # lstm.bias_hh_l0
    w_fc = jax.random.uniform(k5, (OUT_FEATURES, HIDDEN), jnp.float32, -s, s)  # fc1.weight
    b_fc = jax.random.uniform(k6, (OUT_FEATURES,), jnp.float32, -s, s)         # fc1.bias

    x = jax.random.normal(kx, (B, T, INPUT_SIZE), jnp.float32)

    out = rnn_forward(x, w_ih, w_hh, b_ih, b_hh, w_fc, b_fc)
    jax.block_until_ready(out)

    ref = reference_forward(x, w_ih, w_hh, b_ih, b_hh, w_fc, b_fc)
    assert out.shape == (B, 1, OUT_FEATURES), out.shape
    assert jnp.allclose(out, ref, atol=1e-5, rtol=1e-5), float(jnp.max(jnp.abs(out - ref)))

    print("KERNEL_OK")
</pallas_src>

<mosaic_0001>
module attributes {stable_mosaic.version = 11 : i64} {
  func.func @rnn_kernel(%arg0: memref<64x35xf32, #tpu.memory_space<vmem>>, %arg1: memref<35x48xf32, #tpu.memory_space<vmem>>, %arg2: memref<12x48xf32, #tpu.memory_space<vmem>>, %arg3: memref<1x48xf32, #tpu.memory_space<vmem>>, %arg4: memref<12x35xf32, #tpu.memory_space<vmem>>, %arg5: memref<1x35xf32, #tpu.memory_space<vmem>>, %arg6: memref<8x35xf32, #tpu.memory_space<vmem>>) attributes {dimension_semantics = [], scalar_prefetch = 0 : i64, scratch_operands = 0 : i64, tpu.core_type = #tpu.core_type<tc>} {
    %c0 = arith.constant 0 : index
    %c0_0 = arith.constant 0 : index
    %0 = vector.load %arg0[%c0, %c0_0] : memref<64x35xf32, #tpu.memory_space<vmem>>, vector<64x35xf32>
    %c0_1 = arith.constant 0 : index
    %c0_2 = arith.constant 0 : index
    %1 = vector.load %arg1[%c0_1, %c0_2] : memref<35x48xf32, #tpu.memory_space<vmem>>, vector<35x48xf32>
    %cst = arith.constant dense<0.000000e+00> : vector<64x48xf32>
    %2 = tpu.matmul %0, %1, %cst {dimension_numbers = #tpu.dot_dimension_numbers<[1], [0], [0], [1], [0, 0, 1, 1], [], []>} : vector<64x35xf32>, vector<35x48xf32>, vector<64x48xf32> -> vector<64x48xf32>
    %c0_3 = arith.constant 0 : index
    %c0_4 = arith.constant 0 : index
    %3 = vector.load %arg3[%c0_3, %c0_4] : memref<1x48xf32, #tpu.memory_space<vmem>>, vector<1x48xf32>
    %4 = vector.broadcast %3 : vector<1x48xf32> to vector<64x48xf32>
    %5 = arith.addf %2, %4 : vector<64x48xf32>
    %c0_5 = arith.constant 0 : index
    %c0_6 = arith.constant 0 : index
    %6 = vector.load %arg2[%c0_5, %c0_6] : memref<12x48xf32, #tpu.memory_space<vmem>>, vector<12x48xf32>
    %cst_7 = arith.constant 0.000000e+00 : f32
    %7 = vector.broadcast %cst_7 : f32 to vector<8x12xf32>
    %cst_8 = arith.constant 0.000000e+00 : f32
    %8 = vector.broadcast %cst_8 : f32 to vector<8x12xf32>
    %9 = vector.extract_strided_slice %5 {offsets = [0, 0], sizes = [8, 48], strides = [1, 1]} : vector<64x48xf32> to vector<8x48xf32>
    %cst_9 = arith.constant dense<0.000000e+00> : vector<8x48xf32>
    %10 = tpu.matmul %7, %6, %cst_9 {dimension_numbers = #tpu.dot_dimension_numbers<[1], [0], [0], [1], [0, 0, 1, 1], [], []>} : vector<8x12xf32>, vector<12x48xf32>, vector<8x48xf32> -> vector<8x48xf32>
    %11 = arith.addf %9, %10 : vector<8x48xf32>
    %12 = arith.negf %11 : vector<8x48xf32>
    %13 = math.exp %12 : vector<8x48xf32>
    %cst_10 = arith.constant 1.000000e+00 : f32
    %14 = vector.broadcast %cst_10 : f32 to vector<8x48xf32>
    %15 = arith.addf %14, %13 : vector<8x48xf32>
    %16 = arith.divf %14, %15 : vector<8x48xf32>
    %17 = math.tanh %11 : vector<8x48xf32>
    %18 = vector.extract_strided_slice %16 {offsets = [0, 0], sizes = [8, 12], strides = [1, 1]} : vector<8x48xf32> to vector<8x12xf32>
    %19 = vector.extract_strided_slice %16 {offsets = [0, 12], sizes = [8, 12], strides = [1, 1]} : vector<8x48xf32> to vector<8x12xf32>
    %20 = vector.extract_strided_slice %17 {offsets = [0, 24], sizes = [8, 12], strides = [1, 1]} : vector<8x48xf32> to vector<8x12xf32>
    %21 = vector.extract_strided_slice %16 {offsets = [0, 36], sizes = [8, 12], strides = [1, 1]} : vector<8x48xf32> to vector<8x12xf32>
    %22 = arith.mulf %19, %8 : vector<8x12xf32>
    %23 = arith.mulf %18, %20 : vector<8x12xf32>
    %24 = arith.addf %22, %23 : vector<8x12xf32>
    %25 = math.tanh %24 : vector<8x12xf32>
    %26 = arith.mulf %21, %25 : vector<8x12xf32>
    %27 = vector.extract_strided_slice %5 {offsets = [8, 0], sizes = [8, 48], strides = [1, 1]} : vector<64x48xf32> to vector<8x48xf32>
    %cst_11 = arith.constant dense<0.000000e+00> : vector<8x48xf32>
    %28 = tpu.matmul %26, %6, %cst_11 {dimension_numbers = #tpu.dot_dimension_numbers<[1], [0], [0], [1], [0, 0, 1, 1], [], []>} : vector<8x12xf32>, vector<12x48xf32>, vector<8x48xf32> -> vector<8x48xf32>
    %29 = arith.addf %27, %28 : vector<8x48xf32>
    %30 = arith.negf %29 : vector<8x48xf32>
    %31 = math.exp %30 : vector<8x48xf32>
    %cst_12 = arith.constant 1.000000e+00 : f32
    %32 = vector.broadcast %cst_12 : f32 to vector<8x48xf32>
    %33 = arith.addf %32, %31 : vector<8x48xf32>
    %34 = arith.divf %32, %33 : vector<8x48xf32>
    %35 = math.tanh %29 : vector<8x48xf32>
    %36 = vector.extract_strided_slice %34 {offsets = [0, 0], sizes = [8, 12], strides = [1, 1]} : vector<8x48xf32> to vector<8x12xf32>
    %37 = vector.extract_strided_slice %34 {offsets = [0, 12], sizes = [8, 12], strides = [1, 1]} : vector<8x48xf32> to vector<8x12xf32>
    %38 = vector.extract_strided_slice %35 {offsets = [0, 24], sizes = [8, 12], strides = [1, 1]} : vector<8x48xf32> to vector<8x12xf32>
    %39 = vector.extract_strided_slice %34 {offsets = [0, 36], sizes = [8, 12], strides = [1, 1]} : vector<8x48xf32> to vector<8x12xf32>
    %40 = arith.mulf %37, %24 : vector<8x12xf32>
    %41 = arith.mulf %36, %38 : vector<8x12xf32>
    %42 = arith.addf %40, %41 : vector<8x12xf32>
    %43 = math.tanh %42 : vector<8x12xf32>
    %44 = arith.mulf %39, %43 : vector<8x12xf32>
    %45 = vector.extract_strided_slice %5 {offsets = [16, 0], sizes = [8, 48], strides = [1, 1]} : vector<64x48xf32> to vector<8x48xf32>
    %cst_13 = arith.constant dense<0.000000e+00> : vector<8x48xf32>
    %46 = tpu.matmul %44, %6, %cst_13 {dimension_numbers = #tpu.dot_dimension_numbers<[1], [0], [0], [1], [0, 0, 1, 1], [], []>} : vector<8x12xf32>, vector<12x48xf32>, vector<8x48xf32> -> vector<8x48xf32>
    %47 = arith.addf %45, %46 : vector<8x48xf32>
    %48 = arith.negf %47 : vector<8x48xf32>
    %49 = math.exp %48 : vector<8x48xf32>
    %cst_14 = arith.constant 1.000000e+00 : f32
    %50 = vector.broadcast %cst_14 : f32 to vector<8x48xf32>
    %51 = arith.addf %50, %49 : vector<8x48xf32>
    %52 = arith.divf %50, %51 : vector<8x48xf32>
    %53 = math.tanh %47 : vector<8x48xf32>
    %54 = vector.extract_strided_slice %52 {offsets = [0, 0], sizes = [8, 12], strides = [1, 1]} : vector<8x48xf32> to vector<8x12xf32>
    %55 = vector.extract_strided_slice %52 {offsets = [0, 12], sizes = [8, 12], strides = [1, 1]} : vector<8x48xf32> to vector<8x12xf32>
    %56 = vector.extract_strided_slice %53 {offsets = [0, 24], sizes = [8, 12], strides = [1, 1]} : vector<8x48xf32> to vector<8x12xf32>
    %57 = vector.extract_strided_slice %52 {offsets = [0, 36], sizes = [8, 12], strides = [1, 1]} : vector<8x48xf32> to vector<8x12xf32>
    %58 = arith.mulf %55, %42 : vector<8x12xf32>
    %59 = arith.mulf %54, %56 : vector<8x12xf32>
    %60 = arith.addf %58, %59 : vector<8x12xf32>
    %61 = math.tanh %60 : vector<8x12xf32>
    %62 = arith.mulf %57, %61 : vector<8x12xf32>
    %63 = vector.extract_strided_slice %5 {offsets = [24, 0], sizes = [8, 48], strides = [1, 1]} : vector<64x48xf32> to vector<8x48xf32>
    %cst_15 = arith.constant dense<0.000000e+00> : vector<8x48xf32>
    %64 = tpu.matmul %62, %6, %cst_15 {dimension_numbers = #tpu.dot_dimension_numbers<[1], [0], [0], [1], [0, 0, 1, 1], [], []>} : vector<8x12xf32>, vector<12x48xf32>, vector<8x48xf32> -> vector<8x48xf32>
    %65 = arith.addf %63, %64 : vector<8x48xf32>
    %66 = arith.negf %65 : vector<8x48xf32>
    %67 = math.exp %66 : vector<8x48xf32>
    %cst_16 = arith.constant 1.000000e+00 : f32
    %68 = vector.broadcast %cst_16 : f32 to vector<8x48xf32>
    %69 = arith.addf %68, %67 : vector<8x48xf32>
    %70 = arith.divf %68, %69 : vector<8x48xf32>
    %71 = math.tanh %65 : vector<8x48xf32>
    %72 = vector.extract_strided_slice %70 {offsets = [0, 0], sizes = [8, 12], strides = [1, 1]} : vector<8x48xf32> to vector<8x12xf32>
    %73 = vector.extract_strided_slice %70 {offsets = [0, 12], sizes = [8, 12], strides = [1, 1]} : vector<8x48xf32> to vector<8x12xf32>
    %74 = vector.extract_strided_slice %71 {offsets = [0, 24], sizes = [8, 12], strides = [1, 1]} : vector<8x48xf32> to vector<8x12xf32>
    %75 = vector.extract_strided_slice %70 {offsets = [0, 36], sizes = [8, 12], strides = [1, 1]} : vector<8x48xf32> to vector<8x12xf32>
    %76 = arith.mulf %73, %60 : vector<8x12xf32>
    %77 = arith.mulf %72, %74 : vector<8x12xf32>
    %78 = arith.addf %76, %77 : vector<8x12xf32>
    %79 = math.tanh %78 : vector<8x12xf32>
    %80 = arith.mulf %75, %79 : vector<8x12xf32>
    %81 = vector.extract_strided_slice %5 {offsets = [32, 0], sizes = [8, 48], strides = [1, 1]} : vector<64x48xf32> to vector<8x48xf32>
    %cst_17 = arith.constant dense<0.000000e+00> : vector<8x48xf32>
    %82 = tpu.matmul %80, %6, %cst_17 {dimension_numbers = #tpu.dot_dimension_numbers<[1], [0], [0], [1], [0, 0, 1, 1], [], []>} : vector<8x12xf32>, vector<12x48xf32>, vector<8x48xf32> -> vector<8x48xf32>
    %83 = arith.addf %81, %82 : vector<8x48xf32>
    %84 = arith.negf %83 : vector<8x48xf32>
    %85 = math.exp %84 : vector<8x48xf32>
    %cst_18 = arith.constant 1.000000e+00 : f32
    %86 = vector.broadcast %cst_18 : f32 to vector<8x48xf32>
    %87 = arith.addf %86, %85 : vector<8x48xf32>
    %88 = arith.divf %86, %87 : vector<8x48xf32>
    %89 = math.tanh %83 : vector<8x48xf32>
    %90 = vector.extract_strided_slice %88 {offsets = [0, 0], sizes = [8, 12], strides = [1, 1]} : vector<8x48xf32> to vector<8x12xf32>
    %91 = vector.extract_strided_slice %88 {offsets = [0, 12], sizes = [8, 12], strides = [1, 1]} : vector<8x48xf32> to vector<8x12xf32>
    %92 = vector.extract_strided_slice %89 {offsets = [0, 24], sizes = [8, 12], strides = [1, 1]} : vector<8x48xf32> to vector<8x12xf32>
    %93 = vector.extract_strided_slice %88 {offsets = [0, 36], sizes = [8, 12], strides = [1, 1]} : vector<8x48xf32> to vector<8x12xf32>
    %94 = arith.mulf %91, %78 : vector<8x12xf32>
    %95 = arith.mulf %90, %92 : vector<8x12xf32>
    %96 = arith.addf %94, %95 : vector<8x12xf32>
    %97 = math.tanh %96 : vector<8x12xf32>
    %98 = arith.mulf %93, %97 : vector<8x12xf32>
    %99 = vector.extract_strided_slice %5 {offsets = [40, 0], sizes = [8, 48], strides = [1, 1]} : vector<64x48xf32> to vector<8x48xf32>
    %cst_19 = arith.constant dense<0.000000e+00> : vector<8x48xf32>
    %100 = tpu.matmul %98, %6, %cst_19 {dimension_numbers = #tpu.dot_dimension_numbers<[1], [0], [0], [1], [0, 0, 1, 1], [], []>} : vector<8x12xf32>, vector<12x48xf32>, vector<8x48xf32> -> vector<8x48xf32>
    %101 = arith.addf %99, %100 : vector<8x48xf32>
    %102 = arith.negf %101 : vector<8x48xf32>
    %103 = math.exp %102 : vector<8x48xf32>
    %cst_20 = arith.constant 1.000000e+00 : f32
    %104 = vector.broadcast %cst_20 : f32 to vector<8x48xf32>
    %105 = arith.addf %104, %103 : vector<8x48xf32>
    %106 = arith.divf %104, %105 : vector<8x48xf32>
    %107 = math.tanh %101 : vector<8x48xf32>
    %108 = vector.extract_strided_slice %106 {offsets = [0, 0], sizes = [8, 12], strides = [1, 1]} : vector<8x48xf32> to vector<8x12xf32>
    %109 = vector.extract_strided_slice %106 {offsets = [0, 12], sizes = [8, 12], strides = [1, 1]} : vector<8x48xf32> to vector<8x12xf32>
    %110 = vector.extract_strided_slice %107 {offsets = [0, 24], sizes = [8, 12], strides = [1, 1]} : vector<8x48xf32> to vector<8x12xf32>
    %111 = vector.extract_strided_slice %106 {offsets = [0, 36], sizes = [8, 12], strides = [1, 1]} : vector<8x48xf32> to vector<8x12xf32>
    %112 = arith.mulf %109, %96 : vector<8x12xf32>
    %113 = arith.mulf %108, %110 : vector<8x12xf32>
    %114 = arith.addf %112, %113 : vector<8x12xf32>
    %115 = math.tanh %114 : vector<8x12xf32>
    %116 = arith.mulf %111, %115 : vector<8x12xf32>
    %117 = vector.extract_strided_slice %5 {offsets = [48, 0], sizes = [8, 48], strides = [1, 1]} : vector<64x48xf32> to vector<8x48xf32>
    %cst_21 = arith.constant dense<0.000000e+00> : vector<8x48xf32>
    %118 = tpu.matmul %116, %6, %cst_21 {dimension_numbers = #tpu.dot_dimension_numbers<[1], [0], [0], [1], [0, 0, 1, 1], [], []>} : vector<8x12xf32>, vector<12x48xf32>, vector<8x48xf32> -> vector<8x48xf32>
    %119 = arith.addf %117, %118 : vector<8x48xf32>
    %120 = arith.negf %119 : vector<8x48xf32>
    %121 = math.exp %120 : vector<8x48xf32>
    %cst_22 = arith.constant 1.000000e+00 : f32
    %122 = vector.broadcast %cst_22 : f32 to vector<8x48xf32>
    %123 = arith.addf %122, %121 : vector<8x48xf32>
    %124 = arith.divf %122, %123 : vector<8x48xf32>
    %125 = math.tanh %119 : vector<8x48xf32>
    %126 = vector.extract_strided_slice %124 {offsets = [0, 0], sizes = [8, 12], strides = [1, 1]} : vector<8x48xf32> to vector<8x12xf32>
    %127 = vector.extract_strided_slice %124 {offsets = [0, 12], sizes = [8, 12], strides = [1, 1]} : vector<8x48xf32> to vector<8x12xf32>
    %128 = vector.extract_strided_slice %125 {offsets = [0, 24], sizes = [8, 12], strides = [1, 1]} : vector<8x48xf32> to vector<8x12xf32>
    %129 = vector.extract_strided_slice %124 {offsets = [0, 36], sizes = [8, 12], strides = [1, 1]} : vector<8x48xf32> to vector<8x12xf32>
    %130 = arith.mulf %127, %114 : vector<8x12xf32>
    %131 = arith.mulf %126, %128 : vector<8x12xf32>
    %132 = arith.addf %130, %131 : vector<8x12xf32>
    %133 = math.tanh %132 : vector<8x12xf32>
    %134 = arith.mulf %129, %133 : vector<8x12xf32>
    %135 = vector.extract_strided_slice %5 {offsets = [56, 0], sizes = [8, 48], strides = [1, 1]} : vector<64x48xf32> to vector<8x48xf32>
    %cst_23 = arith.constant dense<0.000000e+00> : vector<8x48xf32>
    %136 = tpu.matmul %134, %6, %cst_23 {dimension_numbers = #tpu.dot_dimension_numbers<[1], [0], [0], [1], [0, 0, 1, 1], [], []>} : vector<8x12xf32>, vector<12x48xf32>, vector<8x48xf32> -> vector<8x48xf32>
    %137 = arith.addf %135, %136 : vector<8x48xf32>
    %138 = arith.negf %137 : vector<8x48xf32>
    %139 = math.exp %138 : vector<8x48xf32>
    %cst_24 = arith.constant 1.000000e+00 : f32
    %140 = vector.broadcast %cst_24 : f32 to vector<8x48xf32>
    %141 = arith.addf %140, %139 : vector<8x48xf32>
    %142 = arith.divf %140, %141 : vector<8x48xf32>
    %143 = math.tanh %137 : vector<8x48xf32>
    %144 = vector.extract_strided_slice %142 {offsets = [0, 0], sizes = [8, 12], strides = [1, 1]} : vector<8x48xf32> to vector<8x12xf32>
    %145 = vector.extract_strided_slice %142 {offsets = [0, 12], sizes = [8, 12], strides = [1, 1]} : vector<8x48xf32> to vector<8x12xf32>
    %146 = vector.extract_strided_slice %143 {offsets = [0, 24], sizes = [8, 12], strides = [1, 1]} : vector<8x48xf32> to vector<8x12xf32>
    %147 = vector.extract_strided_slice %142 {offsets = [0, 36], sizes = [8, 12], strides = [1, 1]} : vector<8x48xf32> to vector<8x12xf32>
    %148 = arith.mulf %145, %132 : vector<8x12xf32>
    %149 = arith.mulf %144, %146 : vector<8x12xf32>
    %150 = arith.addf %148, %149 : vector<8x12xf32>
    %151 = math.tanh %150 : vector<8x12xf32>
    %152 = arith.mulf %147, %151 : vector<8x12xf32>
    %cst_25 = arith.constant 0.000000e+00 : f32
    %153 = vector.broadcast %cst_25 : f32 to vector<8x12xf32>
    %154 = arith.maximumf %152, %153 : vector<8x12xf32>
    %c0_26 = arith.constant 0 : index
    %c0_27 = arith.constant 0 : index
    %155 = vector.load %arg4[%c0_26, %c0_27] : memref<12x35xf32, #tpu.memory_space<vmem>>, vector<12x35xf32>
    %cst_28 = arith.constant dense<0.000000e+00> : vector<8x35xf32>
    %156 = tpu.matmul %154, %155, %cst_28 {dimension_numbers = #tpu.dot_dimension_numbers<[1], [0], [0], [1], [0, 0, 1, 1], [], []>} : vector<8x12xf32>, vector<12x35xf32>, vector<8x35xf32> -> vector<8x35xf32>
    %c0_29 = arith.constant 0 : index
    %c0_30 = arith.constant 0 : index
    %157 = vector.load %arg5[%c0_29, %c0_30] : memref<1x35xf32, #tpu.memory_space<vmem>>, vector<1x35xf32>
    %158 = vector.broadcast %157 : vector<1x35xf32> to vector<8x35xf32>
    %159 = arith.addf %156, %158 : vector<8x35xf32>
    %c0_31 = arith.constant 0 : index
    %c0_32 = arith.constant 0 : index
    %160 = vector.load %arg6[%c0_31, %c0_32] : memref<8x35xf32, #tpu.memory_space<vmem>>, vector<8x35xf32>
    tpu.vector_store %arg6[%c0_31, %c0_32], %159 {strides = array<i32>} : memref<8x35xf32, #tpu.memory_space<vmem>>, vector<8x35xf32>,
    return
  }
}

</mosaic_0001>

<bundles_post_ra>
// kernel: rnn_forward.1
= control target key start
LH: loop header
LB: loop body
LE: loop exit
PB: predicated region body
PF: predicated region fallthrough
CT: control target
= control target key end

     0   :  { %vm65_vm0 = vcmask 1042432   ;;  %vm40_vm1 = vcmask 285696   ;;  %vm116_vm2 = vcmask 1043456   ;;  %v779_v9 = vmov 0.0   ;;  %s780_s15 = smov 104   ;;  %s782_s16 = smov 24   ;;  %s979_s1 = inlined_call_operand.vmem [shape: f32[35,48], index: 1, kind: input, shape index: {}]   ;;  %s980_s3 = inlined_call_operand.vmem [shape: f32[1,48], index: 3, kind: input, shape index: {}]   ;;  %s981_s0 = inlined_call_operand.vmem [shape: f32[64,35], index: 0, kind: input, shape index: {}]   ;;  %s982_s2 = inlined_call_operand.vmem [shape: f32[12,48], index: 2, kind: input, shape index: {}]   ;;  %s983_s4 = inlined_call_operand.vmem [shape: f32[12,35], index: 4, kind: input, shape index: {}]   ;;  %s984_s5 = inlined_call_operand.vmem [shape: f32[1,35], index: 5, kind: input, shape index: {}]   ;;  %s985_s6 = inlined_call_operand.vmem [shape: f32[8,35], index: 6, kind: output, shape index: {}]  }
   0x1   :  { %v35_v0 = vld [vmem:[%s979_s1 + $0x20] sm:$0x7]  ;;  %v34_v1 = vld [vmem:[%s979_s1 + $0x18] sm:$0xff]  ;;  %v33_v2 = vld [vmem:[%s979_s1 + $0x10] sm:$0xff]  ;;  %s783_s19 = smov 92   ;;  %vm112_vm7 = vcmask 97280  }
   0x2   :  { %693 = vmatpush.msk.msra.mxu1 %vm65_vm0, %v35_v0  ;;  %659 = vmatpush.msk.msra.mxu0 %vm65_vm0, %v35_v0  ;;  %v32_v3 = vld [vmem:[%s979_s1 + $0x8] sm:$0xff]  ;;  %v31_v4 = vld [vmem:[%s979_s1] sm:$0xff] }
   0x3   :  { %694 = vmatpush.msk.msra.mxu2 %vm65_vm0, %v35_v0  ;;  %695 = vmatpush.msk.msra.mxu3 %vm65_vm0, %v35_v0  ;;  %v27_v5 = vld [vmem:[%s981_s0 + $0x20] sm:$0xff]  ;;  %v843_v7 = vld [vmem:[%s982_s2 + $0x8] sm:$0xf] }
   0x4   :  { %696 = vmatpush.msra.mxu1 %v34_v1  ;;  %81 = vmatpush.msra.mxu0 %v34_v1  ;;  %v23_v6 = vld [vmem:[%s981_s0] sm:$0xff]  ;;  %v28_v36 = vld [vmem:[%s981_s0 + $0x28] sm:$0xff] }
   0x5   :  { %697 = vmatpush.msra.mxu2 %v34_v1  ;;  %698 = vmatpush.msra.mxu3 %v34_v1  ;;  %v849_v8 = vld [vmem:[%s982_s2] sm:$0xff]  ;;  %v24_v39 = vld [vmem:[%s981_s0 + $0x8] sm:$0xff] }
   0x6   :  { %699 = vmatpush.msra.mxu1 %v33_v2  ;;  %82 = vmatpush.msra.mxu0 %v33_v2  ;;  %v872_v12 = vld [vmem:[%s980_s3] ss:$0 sm:$0xff]  ;;  %s781_s3 = smov 12  }
   0x7   :  { %700 = vmatpush.msra.mxu2 %v33_v2  ;;  %701 = vmatpush.msra.mxu3 %v33_v2  ;;  %v29_v2 = vld [vmem:[%s981_s0 + $0x30] sm:$0xff] }
   0x8   :  { %702 = vmatpush.msra.mxu1 %v32_v3  ;;  %83 = vmatpush.msra.mxu0 %v32_v3 }
   0x9   :  { %703 = vmatpush.msra.mxu2 %v32_v3  ;;  %704 = vmatpush.msra.mxu3 %v32_v3  ;;  %v30_v3 = vld [vmem:[%s981_s0 + $0x38] sm:$0xff] }
   0xa   :  { %705 = vmatpush.msra.mxu1 %v31_v4  ;;  %84 = vmatpush.msra.mxu0 %v31_v4 }
   0xb   :  { %664 = vmatmul.msk.f32.vlgmr.msra.gmra.mxu1 %vm40_vm1, %v27_v5  ;;  %660 = vmatmul.msk.f32.vlgmr.msra.gmra.mxu0 %vm40_vm1, %v23_v6  ;;  %v25_v6 = vld [vmem:[%s981_s0 + $0x10] sm:$0xff] }
   0xc   :  { %668 = vmatpush.msk.msrb.mxu1 %vm116_vm2, %v843_v7  ;;  %706 = vmatpush.msra.mxu2 %v31_v4 }
   0xd   :  { %707 = vmatpush.msra.mxu3 %v31_v4  ;;  %665 = vmatmul.msk.f32.vlgmr.msra.gmra.mxu2 %vm40_vm1, %v28_v36  ;;  %v26_v36 = vld [vmem:[%s981_s0 + $0x18] sm:$0xff] }
   0xe   :  { %670 = vmatpush.msk.msrb.mxu2 %vm116_vm2, %v843_v7  ;;  %135 = vmatpush.msrb.mxu1 %v849_v8 }
   0xf   :  { %673 = vmatpush.msk.msrb.mxu3 %vm116_vm2, %v843_v7 }
  0x10   :  { %198 = vmatpush.msrb.mxu2 %v849_v8  ;;  %676 = vmatpush.msk.msra.mxu1 %vm116_vm2, %v843_v7 }
  0x11   :  { %261 = vmatpush.msrb.mxu3 %v849_v8 }
  0x12   :  { %324 = vmatpush.msra.mxu1 %v849_v8  ;;  %679 = vmatpush.msk.msra.mxu2 %vm116_vm2, %v843_v7 }
  0x13   :  { %136 = vmatmul.f32.vlgmr.msrb.gmra.mxu1 %v779_v9  ;;  %661 = vmatmul.msk.f32.gmra.mxu0 %vm40_vm1, %v24_v39 }
  0x14   :  { %685 = vmatpush.msk.msrb.mxu1 %vm116_vm2, %v843_v7  ;;  %387 = vmatpush.msra.mxu2 %v849_v8 }
  0x15   :  { %666 = vmatmul.msk.f32.vlgmr.msra.gmra.mxu3 %vm40_vm1, %v29_v2 }
  0x16   :  { %513 = vmatpush.msrb.mxu1 %v849_v8  ;;  %682 = vmatpush.msk.msra.mxu3 %vm116_vm2, %v843_v7 }
  0x18   :  { %450 = vmatpush.msra.mxu3 %v849_v8 }
  0x1b   :  { %662 = vmatmul.msk.f32.gmra.mxu0 %vm40_vm1, %v25_v6 }
  0x1d   :  { %667 = vmatmul.msk.f32.gmra.mxu3 %vm40_vm1, %v30_v3 }
  0x23   :  { %663 = vmatmul.msk.f32.gmra.mxu0 %vm40_vm1, %v26_v36 }
  0x88   :  { %v867_v10 = vpop.f32.mrf.mxu1  ;;  %v86_v11 = vpop.f32.mrf.mxu0 }
  0x89   :  { %v87_v13 = vadd.f32 %v872_v12, %v86_v11 }
  0x90   :  { %v137_v14 = vpop.f32.mrf.mxu1  ;;  %v894_v41 = vpop.f32.mrf.mxu2 }
  0x91   :  { %v140_v15 = vadd.f32 %v137_v14, %v87_v13  ;;  %v89_v42 = vpop.f32.mrf.mxu0 }
  0x92   :  { %v90_v43 = vadd.f32 %v872_v12, %v89_v42 }
  0x93   :  { %715 = vtanh.f32 %v140_v15  ;;  %v669_v17 = vmul.f32 -1.442695, %v140_v15 }
  0x95   :  { %717 = vpow2.f32 %v669_v17 }
  0x99   :  { %v716_v16 = vpop.eup %715  ;;  %v92_v11 = vpop.f32.mrf.mxu0 }
  0x9a   :  { %163 = vrot.lane.b32.xlu0 %v716_v16, %s780_s15  ;;  %v93_v13 = vadd.f32 %v872_v12, %v92_v11 }
  0x9b   :  { %v718_v18 = vpop.eup %717 }
  0x9c   :  { %v144_v19 = vadd.f32 1.0, %v718_v18 }
  0x9e   :  { %719 = vrcp.f32 %v144_v19  ;;  %v156_v25 = vand.u32 2147483648, %v144_v19  ;;  %vm150_vm4 = vweird.f32 %v144_v19  ;;  %v154_v26 = vand.u32 2147483647, %v144_v19 }
  0xa0   :  { %v157_v28 = vor.u32 1.1754944e-38, %v156_v25  ;;  %vm155_vm6 = vcmp.eq.f32.partialorder %v154_v26, 8.507059e+37 }
  0xa4   :  { %v720_v20 = vpop.eup %719 }
  0xa5   :  { %v146_v21 = vmul.f32 %v720_v20, %v144_v19  ;;  %vm151_vm3 = vweird.f32 %v720_v20 }
  0xa6   :  { %vm152_vm5 = vmor %vm150_vm4, %vm151_vm3 }
  0xa7   :  { %v147_v22 = vsub.f32 1.0, %v146_v21 }
  0xa9   :  { %v148_v23 = vmul.f32 %v720_v20, %v147_v22 }
  0xab   :  { %v149_v24 = vadd.f32 %v720_v20, %v148_v23 }
  0xad   :  { %v153_v27 = vsel %vm152_vm5, %v720_v20, %v149_v24 }
  0xae   :  { %v158_v30 = vsel %vm155_vm6, %v157_v28, %v153_v27 }
  0xaf   :  { %v161_v32 = vmul.f32 0.0, %v158_v30 }
 0x10c   :  { %v164_v29 = vpop.permute.xlu0 %163 }
 0x10d   :  { %v166_v31 = vmul.f32 %v164_v29, %v158_v30 }
 0x10f   :  { %168 = vrot.lane.b32.xlu0 %v166_v31, %s781_s3 }
 0x181   :  { %v169_v33 = vpop.permute.xlu0 %168 }
 0x182   :  { %v171_v34 = vadd.f32 %v169_v33, %v161_v32 }
 0x184   :  { %721 = vtanh.f32 %v171_v34 }
 0x18a   :  { %v722_v35 = vpop.eup %721 }
 0x18b   :  { %174 = vrot.lane.b32.xlu1 %v722_v35, %s782_s16 }
 0x1fd   :  { %v175_v37 = vpop.permute.xlu1 %174 }
 0x1fe   :  { %v177_v38 = vmul.f32 %v175_v37, %v158_v30 }
 0x200   :  { %179 = vrot.lane.b32.xlu1 %v177_v38, %s783_s19 }
 0x272   :  { %v180_v40 = vpop.permute.xlu1 %179 }
 0x273   :  { %671 = vmatmul.msk.f32.vlgmr.msrb.gmra.mxu2 %vm112_vm7, %v180_v40  ;;  %v95_v40 = vpop.f32.mrf.mxu0 }
 0x274   :  { %688 = vmatpush.msk.msrb.mxu2 %vm116_vm2, %v843_v7  ;;  %v917_v7 = vpop.f32.mrf.mxu3  ;;  %v96_v42 = vadd.f32 %v872_v12, %v95_v40 }
 0x276   :  { %576 = vmatpush.msrb.mxu2 %v849_v8 }
 0x27c   :  { %v919_v8 = vpop.f32.mrf.mxu3 }
 0x2f6   :  { %v200_v44 = vpop.f32.mrf.mxu2 }
 0x2f7   :  { %v203_v45 = vadd.f32 %v200_v44, %v90_v43 }
 0x2f9   :  { %723 = vtanh.f32 %v203_v45  ;;  %v672_v47 = vmul.f32 -1.442695, %v203_v45 }
 0x2fb   :  { %725 = vpow2.f32 %v672_v47 }
 0x2ff   :  { %v724_v46 = vpop.eup %723 }
 0x300   :  { %226 = vrot.lane.b32.xlu2 %v724_v46, %s780_s15 }
 0x301   :  { %v726_v48 = vpop.eup %725 }
 0x302   :  { %v207_v49 = vadd.f32 1.0, %v726_v48 }
 0x304   :  { %727 = vrcp.f32 %v207_v49  ;;  %v219_v55 = vand.u32 2147483648, %v207_v49  ;;  %vm213_vm9 = vweird.f32 %v207_v49  ;;  %v217_v56 = vand.u32 2147483647, %v207_v49 }
 0x306   :  { %v220_v58 = vor.u32 1.1754944e-38, %v219_v55  ;;  %vm218_vm11 = vcmp.eq.f32.partialorder %v217_v56, 8.507059e+37 }
 0x30a   :  { %v728_v50 = vpop.eup %727 }
 0x30b   :  { %v209_v51 = vmul.f32 %v728_v50, %v207_v49  ;;  %vm214_vm8 = vweird.f32 %v728_v50 }
 0x30c   :  { %vm215_vm10 = vmor %vm213_vm9, %vm214_vm8 }
 0x30d   :  { %v210_v52 = vsub.f32 1.0, %v209_v51 }
 0x30f   :  { %v211_v53 = vmul.f32 %v728_v50, %v210_v52 }
 0x311   :  { %v212_v54 = vadd.f32 %v728_v50, %v211_v53 }
 0x313   :  { %v216_v57 = vsel %vm215_vm10, %v728_v50, %v212_v54 }
 0x314   :  { %v221_v60 = vsel %vm218_vm11, %v220_v58, %v216_v57 }
 0x315   :  { %v224_v62 = vmul.f32 %v221_v60, %v171_v34 }
 0x35a   :  { %v227_v59 = vpop.permute.xlu2 %226 }
 0x35b   :  { %v229_v61 = vmul.f32 %v227_v59, %v221_v60 }
 0x35d   :  { %231 = vrot.lane.b32.xlu2 %v229_v61, %s781_s3 }
 0x3b7   :  { %v232_v63 = vpop.permute.xlu2 %231 }
 0x3b8   :  { %v234_v0 = vadd.f32 %v232_v63, %v224_v62 }
 0x3ba   :  { %729 = vtanh.f32 %v234_v0 }
 0x3c0   :  { %v730_v1 = vpop.eup %729 }
 0x3c1   :  { %237 = vrot.lane.b32.xlu0 %v730_v1, %s782_s16 }
 0x433   :  { %v238_v4 = vpop.permute.xlu0 %237 }
 0x434   :  { %v240_v5 = vmul.f32 %v238_v4, %v221_v60  ;;  %v99_v4 = vadd.f32 %v872_v12, %v867_v10 }
 0x436   :  { %242 = vrot.lane.b32.xlu1 %v240_v5, %s783_s19 }
 0x4a8   :  { %v243_v9 = vpop.permute.xlu1 %242 }
 0x4a9   :  { %674 = vmatmul.msk.f32.vlgmr.msrb.gmra.mxu3 %vm112_vm7, %v243_v9 }
 0x52c   :  { %v263_v14 = vpop.f32.mrf.mxu3 }
 0x52d   :  { %v266_v15 = vadd.f32 %v263_v14, %v93_v13 }
 0x52f   :  { %731 = vtanh.f32 %v266_v15  ;;  %v675_v17 = vmul.f32 -1.442695, %v266_v15 }
 0x531   :  { %733 = vpow2.f32 %v675_v17 }
 0x535   :  { %v732_v16 = vpop.eup %731 }
 0x536   :  { %289 = vrot.lane.b32.xlu2 %v732_v16, %s780_s15 }
 0x537   :  { %v734_v18 = vpop.eup %733 }
 0x538   :  { %v270_v19 = vadd.f32 1.0, %v734_v18 }
 0x53a   :  { %735 = vrcp.f32 %v270_v19  ;;  %v282_v25 = vand.u32 2147483648, %v270_v19  ;;  %vm276_vm13 = vweird.f32 %v270_v19  ;;  %v280_v26 = vand.u32 2147483647, %v270_v19 }
 0x53c   :  { %v283_v28 = vor.u32 1.1754944e-38, %v282_v25  ;;  %vm281_vm15 = vcmp.eq.f32.partialorder %v280_v26, 8.507059e+37 }
 0x540   :  { %v736_v20 = vpop.eup %735 }
 0x541   :  { %v272_v21 = vmul.f32 %v736_v20, %v270_v19  ;;  %vm277_vm12 = vweird.f32 %v736_v20 }
 0x542   :  { %vm278_vm14 = vmor %vm276_vm13, %vm277_vm12 }
 0x543   :  { %v273_v22 = vsub.f32 1.0, %v272_v21 }
 0x545   :  { %v274_v23 = vmul.f32 %v736_v20, %v273_v22 }
 0x547   :  { %v275_v24 = vadd.f32 %v736_v20, %v274_v23 }
 0x549   :  { %v279_v27 = vsel %vm278_vm14, %v736_v20, %v275_v24 }
 0x54a   :  { %v284_v30 = vsel %vm281_vm15, %v283_v28, %v279_v27 }
 0x54b   :  { %v287_v32 = vmul.f32 %v284_v30, %v234_v0 }
 0x590   :  { %v290_v29 = vpop.permute.xlu2 %289 }
 0x591   :  { %v292_v31 = vmul.f32 %v290_v29, %v284_v30 }
 0x593   :  { %294 = vrot.lane.b32.xlu0 %v292_v31, %s781_s3 }
 0x605   :  { %v295_v33 = vpop.permute.xlu0 %294 }
 0x606   :  { %v297_v34 = vadd.f32 %v295_v33, %v287_v32  ;;  %v102_v33 = vadd.f32 %v872_v12, %v894_v41 }
 0x608   :  { %737 = vtanh.f32 %v297_v34 }
 0x60e   :  { %v738_v35 = vpop.eup %737 }
 0x60f   :  { %300 = vrot.lane.b32.xlu1 %v738_v35, %s782_s16 }
 0x681   :  { %v301_v37 = vpop.permute.xlu1 %300 }
 0x682   :  { %v303_v38 = vmul.f32 %v301_v37, %v284_v30 }
 0x684   :  { %305 = vrot.lane.b32.xlu2 %v303_v38, %s783_s19 }
 0x6de   :  { %v306_v39 = vpop.permute.xlu2 %305 }
 0x6df   :  { %677 = vmatmul.msk.f32.vlgmr.msra.gmra.mxu1 %vm112_vm7, %v306_v39 }
 0x75c   :  { %v326_v43 = vpop.f32.mrf.mxu1 }
 0x75d   :  { %v329_v44 = vadd.f32 %v326_v43, %v96_v42 }
 0x75f   :  { %739 = vtanh.f32 %v329_v44  ;;  %v678_v46 = vmul.f32 -1.442695, %v329_v44 }
 0x761   :  { %741 = vpow2.f32 %v678_v46 }
 0x765   :  { %v740_v45 = vpop.eup %739 }
 0x766   :  { %352 = vrot.lane.b32.xlu0 %v740_v45, %s780_s15 }
 0x767   :  { %v742_v47 = vpop.eup %741 }
 0x768   :  { %v333_v48 = vadd.f32 1.0, %v742_v47 }
 0x76a   :  { %743 = vrcp.f32 %v333_v48  ;;  %v345_v54 = vand.u32 2147483648, %v333_v48  ;;  %vm339_vm3 = vweird.f32 %v333_v48  ;;  %v343_v55 = vand.u32 2147483647, %v333_v48 }
 0x76c   :  { %v346_v57 = vor.u32 1.1754944e-38, %v345_v54  ;;  %vm344_vm5 = vcmp.eq.f32.partialorder %v343_v55, 8.507059e+37 }
 0x770   :  { %v744_v49 = vpop.eup %743 }
 0x771   :  { %v335_v50 = vmul.f32 %v744_v49, %v333_v48  ;;  %vm340_vm0 = vweird.f32 %v744_v49 }
 0x772   :  { %vm341_vm4 = vmor %vm339_vm3, %vm340_vm0 }
 0x773   :  { %v336_v51 = vsub.f32 1.0, %v335_v50 }
 0x775   :  { %v337_v52 = vmul.f32 %v744_v49, %v336_v51 }
 0x777   :  { %v338_v53 = vadd.f32 %v744_v49, %v337_v52 }
 0x779   :  { %v342_v56 = vsel %vm341_vm4, %v744_v49, %v338_v53 }
 0x77a   :  { %v347_v59 = vsel %vm344_vm5, %v346_v57, %v342_v56 }
 0x77b   :  { %v350_v61 = vmul.f32 %v347_v59, %v297_v34 }
 0x7d8   :  { %v353_v58 = vpop.permute.xlu0 %352 }
 0x7d9   :  { %v355_v60 = vmul.f32 %v353_v58, %v347_v59 }
 0x7db   :  { %357 = vrot.lane.b32.xlu1 %v355_v60, %s781_s3 }
 0x84d   :  { %v358_v62 = vpop.permute.xlu1 %357 }
 0x84e   :  { %v360_v63 = vadd.f32 %v358_v62, %v350_v61 }
 0x850   :  { %745 = vtanh.f32 %v360_v63 }
 0x856   :  { %v746_v0 = vpop.eup %745 }
 0x857   :  { %363 = vrot.lane.b32.xlu2 %v746_v0, %s782_s16 }
 0x8b1   :  { %v364_v1 = vpop.permute.xlu2 %363 }
 0x8b2   :  { %v366_v2 = vmul.f32 %v364_v1, %v347_v59  ;;  %v105_v59 = vadd.f32 %v872_v12, %v917_v7 }
 0x8b4   :  { %368 = vrot.lane.b32.xlu0 %v366_v2, %s783_s19 }
 0x926   :  { %v369_v3 = vpop.permute.xlu0 %368 }
 0x927   :  { %680 = vmatmul.msk.f32.vlgmr.msra.gmra.mxu2 %vm112_vm7, %v369_v3 }
 0x9aa   :  { %v389_v5 = vpop.f32.mrf.mxu2 }
 0x9ab   :  { %v392_v6 = vadd.f32 %v389_v5, %v99_v4 }
 0x9ad   :  { %747 = vtanh.f32 %v392_v6  ;;  %v681_v11 = vmul.f32 -1.442695, %v392_v6 }
 0x9af   :  { %749 = vpow2.f32 %v681_v11 }
 0x9b3   :  { %v748_v9 = vpop.eup %747 }
 0x9b4   :  { %415 = vrot.lane.b32.xlu1 %v748_v9, %s780_s15 }
 0x9b5   :  { %v750_v13 = vpop.eup %749 }
 0x9b6   :  { %v396_v14 = vadd.f32 1.0, %v750_v13 }
 0x9b8   :  { %751 = vrcp.f32 %v396_v14  ;;  %v408_v20 = vand.u32 2147483648, %v396_v14  ;;  %vm402_vm8 = vweird.f32 %v396_v14  ;;  %v406_v10 = vand.u32 2147483647, %v396_v14 }
 0x9ba   :  { %v409_v22 = vor.u32 1.1754944e-38, %v408_v20  ;;  %vm407_vm10 = vcmp.eq.f32.partialorder %v406_v10, 8.507059e+37 }
 0x9be   :  { %v752_v15 = vpop.eup %751 }
 0x9bf   :  { %v398_v16 = vmul.f32 %v752_v15, %v396_v14  ;;  %vm403_vm6 = vweird.f32 %v752_v15 }
 0x9c0   :  { %vm404_vm9 = vmor %vm402_vm8, %vm403_vm6 }
 0x9c1   :  { %v399_v17 = vsub.f32 1.0, %v398_v16 }
 0x9c3   :  { %v400_v18 = vmul.f32 %v752_v15, %v399_v17 }
 0x9c5   :  { %v401_v19 = vadd.f32 %v752_v15, %v400_v18 }
 0x9c7   :  { %v405_v21 = vsel %vm404_vm9, %v752_v15, %v401_v19 }
 0x9c8   :  { %v410_v24 = vsel %vm407_vm10, %v409_v22, %v405_v21 }
 0x9c9   :  { %v413_v26 = vmul.f32 %v410_v24, %v360_v63 }
 0xa26   :  { %v416_v23 = vpop.permute.xlu1 %415 }
 0xa27   :  { %v418_v25 = vmul.f32 %v416_v23, %v410_v24  ;;  %v108_v23 = vadd.f32 %v872_v12, %v919_v8 }
 0xa29   :  { %420 = vrot.lane.b32.xlu2 %v418_v25, %s781_s3 }
 0xa83   :  { %v421_v27 = vpop.permute.xlu2 %420 }
 0xa84   :  { %v423_v28 = vadd.f32 %v421_v27, %v413_v26 }
 0xa86   :  { %753 = vtanh.f32 %v423_v28 }
 0xa8c   :  { %v754_v29 = vpop.eup %753 }
 0xa8d   :  { %426 = vrot.lane.b32.xlu0 %v754_v29, %s782_s16 }
 0xaff   :  { %v427_v30 = vpop.permute.xlu0 %426 }
 0xb00   :  { %v429_v31 = vmul.f32 %v427_v30, %v410_v24 }
 0xb02   :  { %431 = vrot.lane.b32.xlu1 %v429_v31, %s783_s19 }
 0xb74   :  { %v432_v32 = vpop.permute.xlu1 %431 }
 0xb75   :  { %683 = vmatmul.msk.f32.vlgmr.msra.gmra.mxu3 %vm112_vm7, %v432_v32 }
 0xbf8   :  { %v452_v34 = vpop.f32.mrf.mxu3 }
 0xbf9   :  { %v455_v35 = vadd.f32 %v452_v34, %v102_v33 }
 0xbfb   :  { %755 = vtanh.f32 %v455_v35  ;;  %v684_v37 = vmul.f32 -1.442695, %v455_v35 }
 0xbfd   :  { %757 = vpow2.f32 %v684_v37 }
 0xc01   :  { %v756_v36 = vpop.eup %755 }
 0xc02   :  { %478 = vrot.lane.b32.xlu2 %v756_v36, %s780_s15 }
 0xc03   :  { %v758_v38 = vpop.eup %757 }
 0xc04   :  { %v459_v39 = vadd.f32 1.0, %v758_v38 }
 0xc06   :  { %759 = vrcp.f32 %v459_v39  ;;  %v471_v46 = vand.u32 2147483648, %v459_v39  ;;  %vm465_vm12 = vweird.f32 %v459_v39  ;;  %v469_v41 = vand.u32 2147483647, %v459_v39 }
 0xc08   :  { %v472_v48 = vor.u32 1.1754944e-38, %v471_v46  ;;  %vm470_vm14 = vcmp.eq.f32.partialorder %v469_v41, 8.507059e+37  ;;  %v620_v46 = vld [vmem:[%s983_s4] sm:$0xff] }
 0xc0c   :  { %v760_v40 = vpop.eup %759 }
 0xc0d   :  { %v461_v42 = vmul.f32 %v760_v40, %v459_v39  ;;  %vm466_vm11 = vweird.f32 %v760_v40 }
 0xc0e   :  { %vm467_vm13 = vmor %vm465_vm12, %vm466_vm11 }
 0xc0f   :  { %v462_v43 = vsub.f32 1.0, %v461_v42 }
 0xc11   :  { %v463_v44 = vmul.f32 %v760_v40, %v462_v43 }
 0xc13   :  { %v464_v45 = vadd.f32 %v760_v40, %v463_v44 }
 0xc15   :  { %v468_v47 = vsel %vm467_vm13, %v760_v40, %v464_v45  ;;  %v621_v45 = vld [vmem:[%s983_s4 + $0x8] sm:$0xf] }
 0xc16   :  { %v473_v50 = vsel %vm470_vm14, %v472_v48, %v468_v47  ;;  %691 = vmatpush.msk.msrb.mxu3 %vm116_vm2, %v621_v45 }
 0xc17   :  { %v476_v52 = vmul.f32 %v473_v50, %v423_v28 }
 0xc18   :  { %649 = vmatpush.msrb.mxu3 %v620_v46 }
 0xc5c   :  { %v479_v49 = vpop.permute.xlu2 %478 }
 0xc5d   :  { %v481_v51 = vmul.f32 %v479_v49, %v473_v50 }
 0xc5f   :  { %483 = vrot.lane.b32.xlu0 %v481_v51, %s781_s3 }
 0xcd1   :  { %v484_v53 = vpop.permute.xlu0 %483 }
 0xcd2   :  { %v486_v54 = vadd.f32 %v484_v53, %v476_v52 }
 0xcd4   :  { %761 = vtanh.f32 %v486_v54 }
 0xcda   :  { %v762_v55 = vpop.eup %761 }
 0xcdb   :  { %489 = vrot.lane.b32.xlu1 %v762_v55, %s782_s16 }
 0xd4d   :  { %v490_v56 = vpop.permute.xlu1 %489 }
 0xd4e   :  { %v492_v57 = vmul.f32 %v490_v56, %v473_v50  ;;  %v714_v50 = vld [vmem:[%s984_s5] ss:$0 sm:$0xff] }
 0xd50   :  { %494 = vrot.lane.b32.xlu2 %v492_v57, %s783_s19 }
 0xdaa   :  { %v495_v58 = vpop.permute.xlu2 %494 }
 0xdab   :  { %686 = vmatmul.msk.f32.vlgmr.msrb.gmra.mxu1 %vm112_vm7, %v495_v58 }
 0xe28   :  { %v515_v60 = vpop.f32.mrf.mxu1 }
 0xe29   :  { %v518_v61 = vadd.f32 %v515_v60, %v105_v59 }
 0xe2b   :  { %763 = vtanh.f32 %v518_v61  ;;  %v687_v63 = vmul.f32 -1.442695, %v518_v61 }
 0xe2d   :  { %765 = vpow2.f32 %v687_v63 }
 0xe31   :  { %v764_v62 = vpop.eup %763 }
 0xe32   :  { %541 = vrot.lane.b32.xlu0 %v764_v62, %s780_s15 }
 0xe33   :  { %v766_v0 = vpop.eup %765 }
 0xe34   :  { %v522_v1 = vadd.f32 1.0, %v766_v0 }
 0xe36   :  { %767 = vrcp.f32 %v522_v1  ;;  %v534_v9 = vand.u32 2147483648, %v522_v1  ;;  %vm528_vm0 = vweird.f32 %v522_v1  ;;  %v532_v7 = vand.u32 2147483647, %v522_v1 }
 0xe38   :  { %v535_v13 = vor.u32 1.1754944e-38, %v534_v9  ;;  %vm533_vm4 = vcmp.eq.f32.partialorder %v532_v7, 8.507059e+37 }
 0xe3c   :  { %v768_v2 = vpop.eup %767 }
 0xe3d   :  { %v524_v3 = vmul.f32 %v768_v2, %v522_v1  ;;  %vm529_vm15 = vweird.f32 %v768_v2 }
 0xe3e   :  { %vm530_vm3 = vmor %vm528_vm0, %vm529_vm15 }
 0xe3f   :  { %v525_v4 = vsub.f32 1.0, %v524_v3 }
 0xe41   :  { %v526_v5 = vmul.f32 %v768_v2, %v525_v4 }
 0xe43   :  { %v527_v6 = vadd.f32 %v768_v2, %v526_v5 }
 0xe45   :  { %v531_v11 = vsel %vm530_vm3, %v768_v2, %v527_v6 }
 0xe46   :  { %v536_v15 = vsel %vm533_vm4, %v535_v13, %v531_v11 }
 0xe47   :  { %v539_v17 = vmul.f32 %v536_v15, %v486_v54 }
 0xea4   :  { %v542_v14 = vpop.permute.xlu0 %541 }
 0xea5   :  { %v544_v16 = vmul.f32 %v542_v14, %v536_v15 }
 0xea7   :  { %546 = vrot.lane.b32.xlu1 %v544_v16, %s781_s3 }
 0xf19   :  { %v547_v18 = vpop.permute.xlu1 %546 }
 0xf1a   :  { %v549_v19 = vadd.f32 %v547_v18, %v539_v17 }
 0xf1c   :  { %769 = vtanh.f32 %v549_v19 }
 0xf22   :  { %v770_v20 = vpop.eup %769 }
 0xf23   :  { %552 = vrot.lane.b32.xlu2 %v770_v20, %s782_s16 }
 0xf7d   :  { %v553_v10 = vpop.permute.xlu2 %552 }
 0xf7e   :  { %v555_v21 = vmul.f32 %v553_v10, %v536_v15 }
 0xf80   :  { %557 = vrot.lane.b32.xlu0 %v555_v21, %s783_s19 }
 0xff2   :  { %v558_v22 = vpop.permute.xlu0 %557 }
 0xff3   :  { %689 = vmatmul.msk.f32.vlgmr.msrb.gmra.mxu2 %vm112_vm7, %v558_v22 }
0x1076   :  { %v578_v24 = vpop.f32.mrf.mxu2 }
0x1077   :  { %v581_v25 = vadd.f32 %v578_v24, %v108_v23 }
0x1079   :  { %771 = vtanh.f32 %v581_v25  ;;  %v690_v27 = vmul.f32 -1.442695, %v581_v25 }
0x107b   :  { %773 = vpow2.f32 %v690_v27 }
0x107f   :  { %v772_v26 = vpop.eup %771 }
0x1080   :  { %604 = vrot.lane.b32.xlu1 %v772_v26, %s780_s15 }
0x1081   :  { %v774_v28 = vpop.eup %773 }
0x1082   :  { %v585_v29 = vadd.f32 1.0, %v774_v28 }
0x1084   :  { %775 = vrcp.f32 %v585_v29  ;;  %v597_v35 = vand.u32 2147483648, %v585_v29  ;;  %vm591_vm6 = vweird.f32 %v585_v29  ;;  %v595_v12 = vand.u32 2147483647, %v585_v29 }
0x1086   :  { %v598_v36 = vor.u32 1.1754944e-38, %v597_v35  ;;  %vm596_vm9 = vcmp.eq.f32.partialorder %v595_v12, 8.507059e+37 }
0x108a   :  { %v776_v30 = vpop.eup %775 }
0x108b   :  { %v587_v31 = vmul.f32 %v776_v30, %v585_v29  ;;  %vm592_vm5 = vweird.f32 %v776_v30 }
0x108c   :  { %vm593_vm8 = vmor %vm591_vm6, %vm592_vm5 }
0x108d   :  { %v588_v32 = vsub.f32 1.0, %v587_v31 }
0x108f   :  { %v589_v33 = vmul.f32 %v776_v30, %v588_v32 }
0x1091   :  { %v590_v34 = vadd.f32 %v776_v30, %v589_v33 }
0x1093   :  { %v594_v8 = vsel %vm593_vm8, %v776_v30, %v590_v34 }
0x1094   :  { %v599_v38 = vsel %vm596_vm9, %v598_v36, %v594_v8 }
0x1095   :  { %v602_v40 = vmul.f32 %v599_v38, %v549_v19 }
0x10f2   :  { %v605_v37 = vpop.permute.xlu1 %604 }
0x10f3   :  { %v607_v39 = vmul.f32 %v605_v37, %v599_v38 }
0x10f5   :  { %609 = vrot.lane.b32.xlu2 %v607_v39, %s781_s3 }
0x114f   :  { %v610_v42 = vpop.permute.xlu2 %609 }
0x1150   :  { %v612_v43 = vadd.f32 %v610_v42, %v602_v40 }
0x1152   :  { %777 = vtanh.f32 %v612_v43 }
0x1158   :  { %v778_v44 = vpop.eup %777 }
0x1159   :  { %615 = vrot.lane.b32.xlu0 %v778_v44, %s782_s16 }
0x11cb   :  { %v616_v41 = vpop.permute.xlu0 %615 }
0x11cc   :  { %v618_v47 = vmul.f32 %v616_v41, %v599_v38 }
0x11ce   :  { %v619_v48 = vmax.f32 %v618_v47, 0.0 }
0x11d0   :  { %627 = vrot.lane.b32.xlu1 %v619_v48, %s783_s19 }
0x1242   :  { %v628_v49 = vpop.permute.xlu1 %627 }
0x1243   :  { %692 = vmatmul.msk.f32.vlgmr.msrb.gmra.mxu3 %vm112_vm7, %v628_v49 }
0x12c6   :  { %v651_v51 = vpop.f32.mrf.mxu3 }
0x12c7   :  { %v652_v52 = vadd.f32 %v714_v50, %v651_v51 }
0x12c9   :  { %654 = vst.msk [vmem:[%s985_s6] sm:$0xff] %vm40_vm1, %v652_v52 }

</bundles_post_ra>
